<compile_context>
chip_gen: v7x
topology: tpu7x:2x2x1
jax: 0.10.0
libtpu: 0.0.40
codegen_flags: <defaults>
</compile_context>

<pallas_src>
import jax
import jax.numpy as jnp
from jax.experimental import pallas as pl
from jax.experimental.pallas import tpu as pltpu


def _round_up(x, m):
    return (x + m - 1) // m * m


# ---------------------------------------------------------------------------
# Generation-aware hardware query (safe fallbacks).
# ---------------------------------------------------------------------------
def _device_info():
    vmem = 64 * 1024 * 1024                      # conservative default (v7x)
    try:
        vmem = int(pltpu.get_tpu_info().vmem_capacity_bytes)
    except Exception:
        pass
    cores = 1
    try:
        kind = jax.devices()[0].device_kind.lower()
        if "v7" in kind:                         # v7x: 2 TensorCores / chip
            cores = 2
    except Exception:
        pass
    return vmem, cores


# ---------------------------------------------------------------------------
# Tiling: pick (batch_block, lane_tile, scoped_vmem_limit).
#   lane tile sized for a multi-MiB per-step DMA volume (generation-aware),
#   batch blocked up too when single images are small; all bounded by VMEM
#   (blocks are double-buffered, so budget 2x(in+out)).
# ---------------------------------------------------------------------------
def _pick_tiling(n, cin, cout, length, itemsize, vmem_capacity):
    if vmem_capacity >= 128 * 1024 * 1024:       # v5e / v6e (128 MiB physical)
        vmem_limit = 100 * 1024 * 1024
        target_step_bytes = 3 * 1024 * 1024
    else:                                        # v7x (64 MiB physical)
        vmem_limit = 44 * 1024 * 1024
        target_step_bytes = 6 * 1024 * 1024
    per_lane = (cin + cout) * itemsize           # in+out bytes per lane per row
    lane_budget = max(128, (vmem_limit // 2) // (2 * per_lane))
    lane_target = max(128, target_step_bytes // per_lane)
    tile_l = min(_round_up(length, 128), lane_target, lane_budget)
    tile_l = max(128, (tile_l // 128) * 128)
    bn = 1
    for cand in range(n, 0, -1):                 # largest divisor of N within target
        if n % cand == 0 and cand * per_lane * tile_l <= max(
                target_step_bytes, per_lane * tile_l):
            bn = cand
            break
    return bn, tile_l, vmem_limit


# ---------------------------------------------------------------------------
# Kernel 1: per-channel reduction over x  ->  Sum(x), Sum(x x^T)
#   Per-partial accumulators (leading grid axis), init on each partial's first
#   step. Both reductions run on the MXU in x's native dtype.
# ---------------------------------------------------------------------------
def _stats_kernel(x_ref, s1_ref, s2_ref):
    # x_ref : (Bn, Cin, T)   s1_ref: (1, 1, Cin)   s2_ref: (1, Cin, Cin)
    @pl.when((pl.program_id(1) == 0) & (pl.program_id(2) == 0))
    def _():
        s1_ref[...] = jnp.zeros_like(s1_ref)
        s2_ref[...] = jnp.zeros_like(s2_ref)

    ones_row = jnp.ones((1, x_ref.shape[-1]), dtype=x_ref.dtype)
    for b in range(x_ref.shape[0]):                       # static unroll over Bn
        xb = x_ref[b]                                     # (Cin, T), native dtype
        # Sum over lanes via MXU (ones-row matmul) -> lane-major (1, Cin).
        s1_ref[0] += jax.lax.dot_general(
            ones_row, xb, (((1,), (1,)), ((), ())),
            preferred_element_type=jnp.float32)
        # Gram matrix x @ x^T (contract lane axes, "nt" form).
        s2_ref[0] += jax.lax.dot_general(
            xb, xb, (((1,), (1,)), ((), ())),
            preferred_element_type=jnp.float32)


def _channel_stats(x_ncl, bn, tile_l, p_eff, vmem_limit):
    n, cin, lp = x_ncl.shape
    lt = lp // tile_l
    tiles_per_part = lt // p_eff
    grid = (p_eff, n // bn, tiles_per_part)

    core_par = getattr(pltpu, "CORE_PARALLEL", None)
    if p_eff > 1 and core_par is not None:
        sems = (core_par, pltpu.ARBITRARY, pltpu.ARBITRARY)
    else:
        sems = ("arbitrary", "arbitrary", "arbitrary")

    return pl.pallas_call(
        _stats_kernel,
        out_shape=(jax.ShapeDtypeStruct((p_eff, 1, cin), jnp.float32),
                   jax.ShapeDtypeStruct((p_eff, cin, cin), jnp.float32)),
        grid_spec=pltpu.PrefetchScalarGridSpec(
            num_scalar_prefetch=0,
            grid=grid,
            in_specs=[pl.BlockSpec(
                (bn, cin, tile_l),
                lambda p, i, j: (i, 0, p * tiles_per_part + j))],
            out_specs=(pl.BlockSpec((1, 1, cin), lambda p, i, j: (p, 0, 0)),
                       pl.BlockSpec((1, cin, cin), lambda p, i, j: (p, 0, 0))),
        ),
        compiler_params=pltpu.CompilerParams(
            dimension_semantics=sems,
            vmem_limit_bytes=vmem_limit),
    )(x_ncl)


# ---------------------------------------------------------------------------
# Kernel 2: fused 1x1 conv + (folded) BatchNorm + ReLU
#   out = relu(W' @ x + b')   with W', b' carrying the BN scale/shift.
# ---------------------------------------------------------------------------
def _conv1x1_bn_relu_kernel(x_ref, w_ref, b_ref, o_ref):
    # x_ref: (Bn, Cin, T)  w_ref: (Cout, Cin)  b_ref: (Cout, 1)  o_ref: (Bn, Cout, T)
    w = w_ref[...]                                        # x's dtype -> native MXU
    b = b_ref[...]                                        # f32, lane-broadcast
    for i in range(x_ref.shape[0]):                       # static unroll over Bn
        y = jnp.dot(w, x_ref[i], preferred_element_type=jnp.float32)
        o_ref[i] = jnp.maximum(y + b, 0.0).astype(o_ref.dtype)


def _apply(x_ncl, w_fold, b_fold_col, bn, tile_l, vmem_limit):
    n, cin, lp = x_ncl.shape
    cout = w_fold.shape[0]
    grid = (n // bn, lp // tile_l)
    # NOTE: on v7x the independent ("parallel") axes are expected to shard
    # across the two TensorCores; the stats pass carries the explicit per-core
    # partials since it has cross-step accumulators.
    return pl.pallas_call(
        _conv1x1_bn_relu_kernel,
        out_shape=jax.ShapeDtypeStruct((n, cout, lp), x_ncl.dtype),
        grid_spec=pltpu.PrefetchScalarGridSpec(
            num_scalar_prefetch=0,
            grid=grid,
            in_specs=[pl.BlockSpec((bn, cin, tile_l), lambda i, j: (i, 0, j)),
                      pl.BlockSpec((cout, cin), lambda i, j: (0, 0)),
                      pl.BlockSpec((cout, 1), lambda i, j: (0, 0))],
            out_specs=pl.BlockSpec((bn, cout, tile_l), lambda i, j: (i, 0, j)),
        ),
        compiler_params=pltpu.CompilerParams(
            dimension_semantics=("parallel", "parallel"),
            vmem_limit_bytes=vmem_limit),
    )(x_ncl, w_fold, b_fold_col)


# ---------------------------------------------------------------------------
# Forward: UnetGridGatingSignal3 (NCHW in / NCHW out, like the PyTorch module)
# ---------------------------------------------------------------------------
def unet_grid_gating_signal3_forward(x_nchw, params, is_batchnorm=True,
                                     eps=1e-5):
    n, cin, h, w = x_nchw.shape
    weight = params["w"].astype(jnp.float32)        # (Cout, Cin)  (1x1 kernel)
    bias = params["b"].astype(jnp.float32)          # (Cout,)
    cout = weight.shape[0]
    length = h * w

    vmem_cap, cores = _device_info()
    itemsize = jnp.dtype(x_nchw.dtype).itemsize
    bn, tile_l, vmem_limit = _pick_tiling(n, cin, cout, length, itemsize,
                                          vmem_cap)

    # Lane padding: multiple of tile_l (and of tile_l * cores when the stats
    # pass is split across TensorCores). Zeros are exact no-ops for the stats.
    lt0 = _round_up(length, tile_l) // tile_l
    p_eff = cores if (is_batchnorm and cores > 1 and lt0 >= cores) else 1
    lp = _round_up(length, tile_l * p_eff)

    x = x_nchw.reshape(n, cin, length)              # free view (contiguous)
    if lp != length:
        x = jnp.pad(x, ((0, 0), (0, 0), (0, lp - length)))

    if is_batchnorm:
        s1p, s2p = _channel_stats(x, bn, tile_l, p_eff, vmem_limit)
        s1 = s1p.sum(axis=0)[0]                     # Sum(x)      (Cin,)
        s2 = s2p.sum(axis=0)                        # Sum(x x^T)  (Cin, Cin)
        m = n * length                              # true count (pad is zeros)
        mu_x = s1 / m                               # E[x]
        exx = s2 / m                                # E[x x^T]
        wmx = weight @ mu_x                         # (Cout,)
        mu_y = wmx + bias                           # E[y]
        eyy = (jnp.einsum('oc,cd,od->o', weight, exx, weight)
               + 2.0 * bias * wmx + bias * bias)    # E[y^2]
        # Clamp: E[y^2]-E[y]^2 can go slightly negative from cancellation.
        var_y = jnp.maximum(eyy - mu_y * mu_y, 0.0)  # biased var (PyTorch BN)
        scale = params["gamma"].astype(jnp.float32) * jax.lax.rsqrt(var_y + eps)
        w_fold = weight * scale[:, None]
        b_fold = (bias - mu_y) * scale + params["beta"].astype(jnp.float32)
    else:
        w_fold, b_fold = weight, bias

    out = _apply(x, w_fold.astype(x.dtype), b_fold.reshape(cout, 1),
                 bn, tile_l, vmem_limit)
    if lp != length:
        out = out[:, :, :length]
    return out.reshape(n, cout, h, w)


# ---------------------------------------------------------------------------
# Plain-JAX reference (for correctness check)
# ---------------------------------------------------------------------------
def _ref_forward(x_nchw, params, is_batchnorm=True, eps=1e-5):
    w = params["w"]
    b = params["b"]
    y = jax.lax.conv_general_dilated(
        x_nchw, w[:, :, None, None], window_strides=(1, 1), padding="VALID",
        dimension_numbers=("NCHW", "OIHW", "NCHW")) + b[None, :, None, None]
    if is_batchnorm:
        mean = y.mean(axis=(0, 2, 3), keepdims=True)
        var = y.var(axis=(0, 2, 3), keepdims=True)          # biased var
        y = (y - mean) / jnp.sqrt(var + eps)
        y = (y * params["gamma"][None, :, None, None]
             + params["beta"][None, :, None, None])
    return jnp.maximum(y, 0.0)


if __name__ == "__main__":
    # Small deterministic setup: batch=2, in_size=4, out_size=8, spatial=16x16
    N, CH_IN, CH_OUT, H, W = 2, 4, 8, 16, 16
    key = jax.random.PRNGKey(0)
    ks = jax.random.split(key, 5)

    w = 0.1 * jax.random.normal(ks[0], (CH_OUT, CH_IN), jnp.float32)
    b = 0.1 * jax.random.normal(ks[1], (CH_OUT,), jnp.float32)
    gamma = 1.0 + 0.1 * jax.random.normal(ks[2], (CH_OUT,), jnp.float32)
    beta = 0.1 * jax.random.normal(ks[3], (CH_OUT,), jnp.float32)
    x = jax.random.normal(ks[4], (N, CH_IN, H, W), jnp.float32)

    params = dict(w=w, b=b, gamma=gamma, beta=beta)

    out = jax.block_until_ready(
        unet_grid_gating_signal3_forward(x, params, is_batchnorm=True))
    ref = jax.block_until_ready(_ref_forward(x, params, is_batchnorm=True))

    assert out.shape == (N, CH_OUT, H, W), out.shape
    max_err = float(jnp.max(jnp.abs(out - ref)))
    assert jnp.allclose(out, ref, atol=1e-4, rtol=1e-4), max_err

    print("KERNEL_OK")
</pallas_src>

<mosaic_0001>
module attributes {stable_mosaic.version = 11 : i64} {
  func.func @_stats_kernel(%arg0: i32, %arg1: i32, %arg2: i32, %arg3: memref<2x4x256xf32, #tpu.memory_space<vmem>>, %arg4: memref<1x1x4xf32, #tpu.memory_space<vmem>>, %arg5: memref<1x4x4xf32, #tpu.memory_space<vmem>>) attributes {dimension_semantics = [#tpu.dimension_semantics<arbitrary>, #tpu.dimension_semantics<arbitrary>, #tpu.dimension_semantics<arbitrary>], iteration_bounds = array<i64: 1, 1, 1>, scalar_prefetch = 0 : i64, scratch_operands = 0 : i64, tpu.core_type = #tpu.core_type<tc>, window_params = [{transform_indices = @transform_0, window_bounds = array<i64: 2, 4, 256>}, {transform_indices = @transform_1, window_bounds = array<i64: 1, 1, 4>}, {transform_indices = @transform_2, window_bounds = array<i64: 1, 4, 4>}]} {
    %c0_i32 = arith.constant 0 : i32
    %0 = arith.cmpi eq, %arg1, %c0_i32 : i32
    %c0_i32_0 = arith.constant 0 : i32
    %1 = arith.cmpi eq, %arg2, %c0_i32_0 : i32
    %2 = arith.andi %0, %1 : i1
    %3 = arith.extui %2 : i1 to i32
    %c0_i32_1 = arith.constant 0 : i32
    %4 = arith.cmpi ne, %3, %c0_i32_1 : i32
    scf.if %4 {
      %cst_34 = arith.constant 0.000000e+00 : f32
      %38 = vector.broadcast %cst_34 : f32 to vector<1x1x4xf32>
      %c0_35 = arith.constant 0 : index
      %c0_36 = arith.constant 0 : index
      %c0_37 = arith.constant 0 : index
      %39 = vector.load %arg4[%c0_35, %c0_36, %c0_37] : memref<1x1x4xf32, #tpu.memory_space<vmem>>, vector<1x1x4xf32>
      tpu.vector_store %arg4[%c0_35, %c0_36, %c0_37], %38 {strides = array<i32>} : memref<1x1x4xf32, #tpu.memory_space<vmem>>, vector<1x1x4xf32>,
      %cst_38 = arith.constant 0.000000e+00 : f32
      %40 = vector.broadcast %cst_38 : f32 to vector<1x4x4xf32>
      %c0_39 = arith.constant 0 : index
      %c0_40 = arith.constant 0 : index
      %c0_41 = arith.constant 0 : index
      %41 = vector.load %arg5[%c0_39, %c0_40, %c0_41] : memref<1x4x4xf32, #tpu.memory_space<vmem>>, vector<1x4x4xf32>
      tpu.vector_store %arg5[%c0_39, %c0_40, %c0_41], %40 {strides = array<i32>} : memref<1x4x4xf32, #tpu.memory_space<vmem>>, vector<1x4x4xf32>,
    } else {
    }
    %cst = arith.constant 1.000000e+00 : f32
    %5 = vector.broadcast %cst : f32 to vector<1x256xf32>
    %c0 = arith.constant 0 : index
    %c0_2 = arith.constant 0 : index
    %c0_3 = arith.constant 0 : index
    %6 = vector.load %arg3[%c0, %c0_2, %c0_3] : memref<2x4x256xf32, #tpu.memory_space<vmem>>, vector<1x4x256xf32>
    %7 = vector.shape_cast %6 : vector<1x4x256xf32> to vector<4x256xf32>
    %c0_4 = arith.constant 0 : index
    %c0_5 = arith.constant 0 : index
    %c0_6 = arith.constant 0 : index
    %8 = vector.load %arg4[%c0_4, %c0_5, %c0_6] : memref<1x1x4xf32, #tpu.memory_space<vmem>>, vector<1x1x4xf32>
    %9 = vector.shape_cast %8 : vector<1x1x4xf32> to vector<1x4xf32>
    %cst_7 = arith.constant dense<0.000000e+00> : vector<1x4xf32>
    %10 = tpu.matmul %5, %7, %cst_7 {dimension_numbers = #tpu.dot_dimension_numbers<[1], [1], [0], [0], [0, 0, 1, 0], [], []>} : vector<1x256xf32>, vector<4x256xf32>, vector<1x4xf32> -> vector<1x4xf32>
    %11 = arith.addf %9, %10 : vector<1x4xf32>
    %c0_8 = arith.constant 0 : index
    %c0_9 = arith.constant 0 : index
    %c0_10 = arith.constant 0 : index
    %12 = vector.load %arg4[%c0_8, %c0_9, %c0_10] : memref<1x1x4xf32, #tpu.memory_space<vmem>>, vector<1x1x4xf32>
    %13 = vector.shape_cast %12 : vector<1x1x4xf32> to vector<1x4xf32>
    %14 = vector.shape_cast %11 : vector<1x4xf32> to vector<1x1x4xf32>
    tpu.vector_store %arg4[%c0_8, %c0_9, %c0_10], %14 {strides = array<i32>} : memref<1x1x4xf32, #tpu.memory_space<vmem>>, vector<1x1x4xf32>,
    %c0_11 = arith.constant 0 : index
    %c0_12 = arith.constant 0 : index
    %c0_13 = arith.constant 0 : index
    %15 = vector.load %arg5[%c0_11, %c0_12, %c0_13] : memref<1x4x4xf32, #tpu.memory_space<vmem>>, vector<1x4x4xf32>
    %16 = vector.shape_cast %15 : vector<1x4x4xf32> to vector<4x4xf32>
    %cst_14 = arith.constant dense<0.000000e+00> : vector<4x4xf32>
    %17 = tpu.matmul %7, %7, %cst_14 {dimension_numbers = #tpu.dot_dimension_numbers<[1], [1], [0], [0], [0, 0, 1, 0], [], []>} : vector<4x256xf32>, vector<4x256xf32>, vector<4x4xf32> -> vector<4x4xf32>
    %18 = arith.addf %16, %17 : vector<4x4xf32>
    %c0_15 = arith.constant 0 : index
    %c0_16 = arith.constant 0 : index
    %c0_17 = arith.constant 0 : index
    %19 = vector.load %arg5[%c0_15, %c0_16, %c0_17] : memref<1x4x4xf32, #tpu.memory_space<vmem>>, vector<1x4x4xf32>
    %20 = vector.shape_cast %19 : vector<1x4x4xf32> to vector<4x4xf32>
    %21 = vector.shape_cast %18 : vector<4x4xf32> to vector<1x4x4xf32>
    tpu.vector_store %arg5[%c0_15, %c0_16, %c0_17], %21 {strides = array<i32>} : memref<1x4x4xf32, #tpu.memory_space<vmem>>, vector<1x4x4xf32>,
    %c1 = arith.constant 1 : index
    %c0_18 = arith.constant 0 : index
    %c0_19 = arith.constant 0 : index
    %22 = vector.load %arg3[%c1, %c0_18, %c0_19] : memref<2x4x256xf32, #tpu.memory_space<vmem>>, vector<1x4x256xf32>
    %23 = vector.shape_cast %22 : vector<1x4x256xf32> to vector<4x256xf32>
    %c0_20 = arith.constant 0 : index
    %c0_21 = arith.constant 0 : index
    %c0_22 = arith.constant 0 : index
    %24 = vector.load %arg4[%c0_20, %c0_21, %c0_22] : memref<1x1x4xf32, #tpu.memory_space<vmem>>, vector<1x1x4xf32>
    %25 = vector.shape_cast %24 : vector<1x1x4xf32> to vector<1x4xf32>
    %cst_23 = arith.constant dense<0.000000e+00> : vector<1x4xf32>
    %26 = tpu.matmul %5, %23, %cst_23 {dimension_numbers = #tpu.dot_dimension_numbers<[1], [1], [0], [0], [0, 0, 1, 0], [], []>} : vector<1x256xf32>, vector<4x256xf32>, vector<1x4xf32> -> vector<1x4xf32>
    %27 = arith.addf %25, %26 : vector<1x4xf32>
    %c0_24 = arith.constant 0 : index
    %c0_25 = arith.constant 0 : index
    %c0_26 = arith.constant 0 : index
    %28 = vector.load %arg4[%c0_24, %c0_25, %c0_26] : memref<1x1x4xf32, #tpu.memory_space<vmem>>, vector<1x1x4xf32>
    %29 = vector.shape_cast %28 : vector<1x1x4xf32> to vector<1x4xf32>
    %30 = vector.shape_cast %27 : vector<1x4xf32> to vector<1x1x4xf32>
    tpu.vector_store %arg4[%c0_24, %c0_25, %c0_26], %30 {strides = array<i32>} : memref<1x1x4xf32, #tpu.memory_space<vmem>>, vector<1x1x4xf32>,
    %c0_27 = arith.constant 0 : index
    %c0_28 = arith.constant 0 : index
    %c0_29 = arith.constant 0 : index
    %31 = vector.load %arg5[%c0_27, %c0_28, %c0_29] : memref<1x4x4xf32, #tpu.memory_space<vmem>>, vector<1x4x4xf32>
    %32 = vector.shape_cast %31 : vector<1x4x4xf32> to vector<4x4xf32>
    %cst_30 = arith.constant dense<0.000000e+00> : vector<4x4xf32>
    %33 = tpu.matmul %23, %23, %cst_30 {dimension_numbers = #tpu.dot_dimension_numbers<[1], [1], [0], [0], [0, 0, 1, 0], [], []>} : vector<4x256xf32>, vector<4x256xf32>, vector<4x4xf32> -> vector<4x4xf32>
    %34 = arith.addf %32, %33 : vector<4x4xf32>
    %c0_31 = arith.constant 0 : index
    %c0_32 = arith.constant 0 : index
    %c0_33 = arith.constant 0 : index
    %35 = vector.load %arg5[%c0_31, %c0_32, %c0_33] : memref<1x4x4xf32, #tpu.memory_space<vmem>>, vector<1x4x4xf32>
    %36 = vector.shape_cast %35 : vector<1x4x4xf32> to vector<4x4xf32>
    %37 = vector.shape_cast %34 : vector<4x4xf32> to vector<1x4x4xf32>
    tpu.vector_store %arg5[%c0_31, %c0_32, %c0_33], %37 {strides = array<i32>} : memref<1x4x4xf32, #tpu.memory_space<vmem>>, vector<1x4x4xf32>,
    return
  }
  func.func @transform_0(%arg0: i32, %arg1: i32, %arg2: i32) -> (i32, i32, i32) {
    %c1_i32 = arith.constant 1 : i32
    %0 = arith.muli %arg0, %c1_i32 : i32
    %1 = arith.addi %0, %arg2 : i32
    %c0_i32 = arith.constant 0 : i32
    %c0_i32_0 = arith.constant 0 : i32
    return %arg1, %c0_i32, %1 : i32, i32, i32
  }
  func.func @transform_1(%arg0: i32, %arg1: i32, %arg2: i32) -> (i32, i32, i32) {
    %c0_i32 = arith.constant 0 : i32
    %c0_i32_0 = arith.constant 0 : i32
    %c0_i32_1 = arith.constant 0 : i32
    return %arg0, %c0_i32, %c0_i32_0 : i32, i32, i32
  }
  func.func @transform_2(%arg0: i32, %arg1: i32, %arg2: i32) -> (i32, i32, i32) {
    %c0_i32 = arith.constant 0 : i32
    %c0_i32_0 = arith.constant 0 : i32
    %c0_i32_1 = arith.constant 0 : i32
    return %arg0, %c0_i32, %c0_i32_0 : i32, i32, i32
  }
}

</mosaic_0001>

<bundles_post_ra>
// kernel: tpu_custom_call.1
= control target key start
LH: loop header
LB: loop body
LE: loop exit
PB: predicated region body
PF: predicated region fallthrough
CT: control target
= control target key end

     0   :  { %8 = vsyncpa [#allocation3], 0  ;;  %s526_s0 = inlined_call_operand.hbm [shape: f32[2,4,256], index: 0, kind: input, shape index: {}]   ;;  %s527_s1 = inlined_call_operand.hbm [shape: f32[1,1,4], index: 1, kind: output, shape index: {0}]   ;;  %s528_s2 = inlined_call_operand.hbm [shape: f32[1,4,4], index: 2, kind: output, shape index: {1}]  }
   0x1   :  { %9 = vsyncpa [#allocation4], 0 }
   0x2   :  { %10 = vsyncpa [#allocation7], 0  ;;  %s455_s9 = smov [#allocation2]   ;;  %s383_s13 = scalar_lea.hbm %s526_s0, 256 }
   0x3   :  { %s20_s10 = sshll.u32 %s455_s9, 4  ;;  %p384_p0 = scmp.ne.s32.totalorder %s526_s0, %s383_s13  ;;  %s21_s10 = int_to_ptr.vmem [resolvable:$true] %s20_s10 }
   0x4   :  { %p387_p1 = scmp.lt.u32.totalorder %s383_s13, %s526_s0 }
   0x6   :  { %p389_p2 = pnand %p387_p1, %p384_p0 }
   0x8   :  { %392 = shalt.err (!%p389_p2)
}
   0x9   :  { %s393_s18 = scalar_lea.vmem %s21_s10, 256  ;;  %p398_p4 = scmp.lt.s32.totalorder %s21_s10, %s21_s10 }
   0xa   :  { %p394_p3 = scmp.ne.s32.totalorder %s21_s10, %s393_s18  ;;  %p399_p5 = scmp.lt.s32.totalorder %s393_s18, %s393_s18 }
   0xc   :  { %p400_p6 = por %p399_p5, %p398_p4 }
   0xe   :  { %p401_p7 = pnand %p400_p6, %p394_p3 }
  0x10   :  { %404 = shalt.err (!%p401_p7)
}
  0x11   :  { %s456_s19 = smov 128   ;;  %s457_s20 = smov 8  }
  0x12   :  { %26 = dma.hbm_to_vmem [thread:$0]  %s526_s0, 256, %s21_s10, [#allocation3], %s456_s19, %s456_s19, %s457_s20  }
  0x13   :  { %449 = dma.done.wait [#allocation3], 256  }
  0x14   :  { %450 = vsyncadd [#allocation3], 4294967040  ;;  %vm38_vm0 = vcmask 24576   ;;  %v458_v0 = vmov 1.0   ;;  %v459_v1 = vmov 0.0   ;;  %v42_v2 = vld [vmem:[#allocation2] sm:$0xff] }
  0x15   :  { %111 = vmatprep.mubr.f32.mxu0 %v458_v0  ;;  %39 = vst.msk [vmem:[#allocation5] sm:$0x1] %vm38_vm0, %v459_v1  ;;  %v195_v3 = vld [vmem:[#allocation2 + $0x8] sm:$0xff]  ;;  %v45_v4 = vcombine.high %v42_v2, %v42_v2  ;;  %vm40_vm1 = vcmask 27648   ;;  %s460_s0 = smov [#allocation5]   ;;  %s461_s24 = smov [#allocation6]  }
  0x16   :  { %v198_v5 = vcombine.high %v195_v3, %v195_v3  ;;  %41 = vst.msk [vmem:[#allocation6] sm:$0xf] %vm40_vm1, %v459_v1  ;;  %s351_s23 = sshll.u32 %s460_s0, 4  ;;  %s361_s25 = sshll.u32 %s461_s24, 4  ;;  %s352_s23 = int_to_ptr.vmem [resolvable:$true] %s351_s23  ;;  %s493_s25 = int_to_ptr.vmem [resolvable:$true] %s361_s25 }
  0x17   :  { %47 = vmatprep.subr.mxu0 %v45_v4  ;;  %121 = vmatprep.subr.mxu1 %v45_v4  ;;  %s405_s26 = scalar_lea.vmem %s352_s23, 16  ;;  %s409_s27 = scalar_lea.vmem %s352_s23, 32 }
  0x18   :  { %48 = vmatpush1.xpose.msra.mxu0 %v42_v2  ;;  %122 = vmatpush1.xpose.msra.mxu1 %v42_v2  ;;  %p406_p8 = scmp.ne.s32.totalorder %s352_s23, %s405_s26  ;;  %p410_p9 = scmp.lt.s32.totalorder %s352_s23, %s352_s23 }
  0x19   :  { %185 = vmatprep.mubr.f32.mxu1 %v45_v4  ;;  %200 = vmatprep.subr.mxu0 %v198_v5  ;;  %p411_p10 = scmp.lt.s32.totalorder %s409_s27, %s405_s26 }
  0x1a   :  { %273 = vmatprep.subr.mxu1 %v198_v5 }
  0x1b   :  { %112 = vmatmul.mubr.f32.vlgmr.msra.gmra.mrb[0].mxu0 %v458_v0  ;;  %186 = vmatmul.mubr.f32.vlgmr.msra.gmra.mrb[0].mxu1 %v42_v2  ;;  %p412_p11 = por %p411_p10, %p410_p9 }
  0x1c   :  { %201 = vmatpush1.xpose.msra.mxu0 %v195_v3  ;;  %274 = vmatpush1.xpose.msra.mxu1 %v195_v3  ;;  %v43_v6 = vld [vmem:[#allocation5] sm:$0x1] }
  0x1d   :  { %264 = vmatprep.mubr.f32.mxu0 %v458_v0  ;;  %337 = vmatprep.mubr.f32.mxu1 %v198_v5  ;;  %v120_v7 = vld [vmem:[#allocation6] sm:$0xf]  ;;  %p413_p12 = pnand %p412_p11, %p406_p8 }
  0x1f   :  { %265 = vmatmul.mubr.f32.vlgmr.msra.gmra.mrb[2].mxu0 %v458_v0  ;;  %338 = vmatmul.mubr.f32.vlgmr.msra.gmra.mrb[2].mxu1 %v195_v3 }
  0xee   :  { %v113_v8 = vpop.f32.mrb[0].mxu0  ;;  %v187_v9 = vpop.f32.mrb[0].mxu1 }
  0xef   :  { %v117_v10 = vadd.f32 %v113_v8, %v43_v6  ;;  %v191_v11 = vadd.f32 %v187_v9, %v120_v7  ;;  %v115_v12 = vpop.f32.mrb[1].mxu0  ;;  %v189_v13 = vpop.f32.mrb[1].mxu1 }
  0xf1   :  { %119 = vst.msk [vmem:[#allocation5] sm:$0x1] %vm38_vm0, %v117_v10 }
  0xf2   :  { %193 = vst.msk [vmem:[#allocation6] sm:$0xf] %vm40_vm1, %v191_v11  ;;  %v266_v14 = vpop.f32.mrb[2].mxu0  ;;  %v339_v15 = vpop.f32.mrb[2].mxu1 }
  0xf3   :  { %v268_v16 = vpop.f32.mrb[3].mxu0  ;;  %v341_v17 = vpop.f32.mrb[3].mxu1 }
  0xf8   :  { %v196_v18 = vld [vmem:[#allocation5] sm:$0x1] }
  0xf9   :  { %v272_v19 = vld [vmem:[#allocation6] sm:$0xf]  ;;  %v270_v20 = vadd.f32 %v266_v14, %v196_v18 }
  0xfa   :  { %v343_v21 = vadd.f32 %v339_v15, %v272_v19 }
  0xfb   :  { %271 = vst.msk [vmem:[#allocation5] sm:$0x1] %vm38_vm0, %v270_v20 }
  0xfc   :  { %344 = vst.msk [vmem:[#allocation6] sm:$0xf] %vm40_vm1, %v343_v21 }
  0xfd   :  { %416 = shalt.err (!%p413_p12)
}
  0xfe   :  { %s417_s30 = scalar_lea.hbm %s527_s1, 16 }
  0xff   :  { %p418_p13 = scmp.ne.s32.totalorder %s527_s1, %s417_s30  ;;  %p421_p0 = scmp.lt.u32.totalorder %s417_s30, %s527_s1 }
 0x101   :  { %p423_p1 = pnand %p421_p0, %p418_p13 }
 0x103   :  { %426 = shalt.err (!%p423_p1)
}
 0x104   :  { %354 = dma.vmem_to_hbm [thread:$0]  %s352_s23, 16, %s527_s1, [#allocation4]  }
 0x105   :  { %s427_s9 = scalar_lea.vmem %s493_s25, 64  ;;  %p432_p3 = scmp.lt.s32.totalorder %s493_s25, %s493_s25 }
 0x106   :  { %p428_p2 = scmp.ne.s32.totalorder %s493_s25, %s427_s9  ;;  %p433_p4 = scmp.lt.s32.totalorder %s427_s9, %s427_s9 }
 0x108   :  { %p434_p5 = por %p433_p4, %p432_p3 }
 0x10a   :  { %p435_p6 = pnand %p434_p5, %p428_p2 }
 0x10c   :  { %438 = shalt.err (!%p435_p6)
}
 0x10d   :  { %s439_s12 = scalar_lea.hbm %s528_s2, 64 }
 0x10e   :  { %p440_p7 = scmp.ne.s32.totalorder %s528_s2, %s439_s12  ;;  %p443_p8 = scmp.lt.u32.totalorder %s439_s12, %s528_s2 }
 0x110   :  { %p445_p9 = pnand %p443_p8, %p440_p7 }
 0x112   :  { %448 = shalt.err (!%p445_p9)
}
 0x113   :  { %364 = dma.vmem_to_hbm [thread:$0]  %s493_s25, 64, %s528_s2, [#allocation7]  }
 0x114   :  { %451 = dma.done.wait [#allocation4], 16  }
 0x115   :  { %452 = vsyncadd [#allocation4], 4294967280 }
 0x116   :  { %453 = dma.done.wait [#allocation7], 64  }
 0x117   :  { %454 = vsyncadd [#allocation7], 4294967232 }
 0x118   :  { %371 = vsyncpa [#allocation3], 1 }
 0x119   :  { %372 = vsyncpa [#allocation4], 1 }
 0x11a   :  { %373 = vsyncpa [#allocation7], 1 }

</bundles_post_ra>
